<compile_context>
chip_gen: v5e
topology: v5e:2x2
jax: 0.10.0
libtpu: 0.0.40
codegen_flags: <defaults>
</compile_context>

<pallas_src>
import jax
import jax.numpy as jnp
from jax import lax
from jax.experimental import pallas as pl
from jax.experimental.pallas import tpu as pltpu


def _round_up(x: int, m: int) -> int:
    return ((x + m - 1) // m) * m


# --------------------------------------------------------------------------
# Tile sizing
# --------------------------------------------------------------------------
def _packed_block_rows(bp_rows: int, itemsize: int) -> int:
    # ~8 MiB of y_pred per tile; with the int8 mask and double buffering the
    # total stays ~20-24 MiB (fits v7x's 64 MiB/TC with headroom, and v5e/v6e
    # trivially).  Also make sure a 2-TensorCore chip (v7x) gets >=2 steps.
    target = (8 << 20) // (128 * itemsize)          # rows of 128 lanes
    half = _round_up(-(-bp_rows // 2), 32)          # >=2 tiles when possible
    return max(32, min(target, half))               # 32: int8 sublane tiling


def _rowwise_block_rows(batch: int, num_classes: int, itemsize: int) -> int:
    # VMEM bytes per row: lane-padded y_pred block + lane-padded (TB,1)
    # columns (labels / weights / temps occupy 1 of 128 lanes -> ~512 B each).
    lane_c = _round_up(num_classes, 128)
    vmem_row = lane_c * itemsize + 2048
    target = _round_up(max(16, (6 << 20) // vmem_row), 16)
    half = _round_up(-(-batch // 2), 16)
    return max(16, min(target, half))


# --------------------------------------------------------------------------
# Kernels
# --------------------------------------------------------------------------
def _make_packed_kernel(gamma: int):
    # mask_ref: (TB,128) int8  -- the module's scatter'd one-hot, lane-packed
    # p_ref:    (TB,128) native dtype -- y_pred, lane-packed
    # w_ref:    (1,128)  f32   -- class_weight tiled across the 128 lanes
    # out_ref:  (1,1,1)  f32   -- per-tile partial sum
    def kernel(mask_ref, p_ref, w_ref, out_ref):
        sel = mask_ref[...] != 0
        p = jnp.clip(p_ref[...].astype(jnp.float32), 1e-6, 1.0 - 1e-6)
        om = 1.0 - p
        # focal + bce + active fused: -log(p)*((1-p)^g + 1) + (1-p)
        f = -jnp.log(p) * (om ** gamma + 1.0) + om
        contrib = jnp.where(sel, w_ref[...] * f, 0.0)   # true select: OOB/NaN -> 0
        out_ref[...] = jnp.sum(contrib).reshape(1, 1, 1)
    return kernel


def _make_rowwise_kernel(gamma: int):
    # yt_ref: (TB,1) int32 labels, padded rows hold sentinel -1
    # wt_ref: (TB,1) f32 per-row class weight (0 on padded rows)
    # p_ref:  (TB,C) native dtype y_pred
    def kernel(yt_ref, wt_ref, p_ref, out_ref):
        yt = yt_ref[...]
        p = p_ref[...]
        tb, c = p.shape
        cols = lax.broadcasted_iota(jnp.int32, (tb, c), 1)
        sel = cols == yt                                   # sentinel -> all False
        zero = jnp.zeros((), p.dtype)
        p_t = jnp.sum(jnp.where(sel, p, zero), axis=-1,
                      keepdims=True).astype(jnp.float32)   # exact one-hot gather
        p_t = jnp.clip(p_t, 1e-6, 1.0 - 1e-6)
        om = 1.0 - p_t
        per_row = wt_ref[...] * (-jnp.log(p_t) * (om ** gamma + 1.0) + om)
        out_ref[...] = jnp.sum(per_row).reshape(1, 1, 1)
    return kernel


_COMPILER_PARAMS = pltpu.CompilerParams(
    dimension_semantics=("parallel",),       # megacore-shardable on v7x
    vmem_limit_bytes=40 * 1024 * 1024,       # safe on v5e/v6e (128 MiB) & v7x (64 MiB)
)


# --------------------------------------------------------------------------
# Wrappers
# --------------------------------------------------------------------------
def _packed_partials(y_true, y_pred, w32, gamma, block_rows):
    B, C = y_pred.shape
    R = 128 // C
    itemsize = jnp.dtype(y_pred.dtype).itemsize

    # int8 one-hot selection mask == the module's scatter'd yTrueOnehot.
    onehot = (y_true[:, None] == jnp.arange(C, dtype=jnp.int32)[None, :])
    mask = onehot.astype(jnp.int8).reshape(-1)                 # (B*C,)

    bp = -(-(B * C) // 128)                                    # packed data rows
    tbp = (_packed_block_rows(bp, itemsize) if block_rows is None
           else max(32, _round_up(int(block_rows), 32)))
    num_tiles = pl.cdiv(bp, tbp)
    padded_rows = num_tiles * tbp

    # Mask is padded with zeros to the full grid so OOB y_pred garbage in the
    # ragged last block is never selected.  y_pred itself is only padded to a
    # 128 boundary (a no-copy reshape whenever B*C is a multiple of 128).
    mask = jnp.pad(mask, (0, padded_rows * 128 - B * C)).reshape(padded_rows, 128)
    pflat = y_pred.reshape(-1)
    if (B * C) % 128 != 0:
        pflat = jnp.pad(pflat, (0, bp * 128 - B * C), constant_values=0.5)
    p_packed = pflat.reshape(bp, 128)
    w_lane = jnp.tile(w32, R).reshape(1, 128)

    partials = pl.pallas_call(
        _make_packed_kernel(gamma),
        out_shape=jax.ShapeDtypeStruct((num_tiles, 1, 1), jnp.float32),
        grid=(num_tiles,),
        in_specs=[
            pl.BlockSpec((tbp, 128), lambda i: (i, 0)),    # one-hot mask (int8)
            pl.BlockSpec((tbp, 128), lambda i: (i, 0)),    # y_pred, lane-packed
            pl.BlockSpec((1, 128), lambda i: (0, 0)),      # class weights (replicated)
        ],
        out_specs=pl.BlockSpec((1, 1, 1), lambda i: (i, 0, 0)),
        compiler_params=_COMPILER_PARAMS,
        cost_estimate=pl.CostEstimate(
            flops=12 * B * C,
            transcendentals=B * C,
            bytes_accessed=(itemsize + 1) * B * C + 4 * num_tiles),
    )(mask, p_packed, w_lane)
    return jnp.sum(partials)


def _rowwise_partials(y_true, y_pred, w32, gamma, block_rows):
    B, C = y_pred.shape
    itemsize = jnp.dtype(y_pred.dtype).itemsize
    tb = (_rowwise_block_rows(B, C, itemsize) if block_rows is None
          else max(16, _round_up(int(block_rows), 16)))
    num_tiles = pl.cdiv(B, tb)
    padded_B = num_tiles * tb

    # Sentinel-padded labels (-1 never matches a class column) and zero-padded
    # per-row weights: padded rows select nothing and contribute exactly zero,
    # so the kernel needs no per-element validity mask.
    yt = jnp.pad(y_true, (0, padded_B - B), constant_values=-1).reshape(padded_B, 1)
    w_t = jnp.pad(w32[y_true], (0, padded_B - B)).reshape(padded_B, 1)

    partials = pl.pallas_call(
        _make_rowwise_kernel(gamma),
        out_shape=jax.ShapeDtypeStruct((num_tiles, 1, 1), jnp.float32),
        grid=(num_tiles,),
        in_specs=[
            pl.BlockSpec((tb, 1), lambda i: (i, 0)),       # labels
            pl.BlockSpec((tb, 1), lambda i: (i, 0)),       # per-row weight
            pl.BlockSpec((tb, C), lambda i: (i, 0)),       # y_pred
        ],
        out_specs=pl.BlockSpec((1, 1, 1), lambda i: (i, 0, 0)),
        compiler_params=_COMPILER_PARAMS,
        cost_estimate=pl.CostEstimate(
            flops=4 * B * C + 12 * B,
            transcendentals=B,
            bytes_accessed=itemsize * B * C + 8 * B + 4 * num_tiles),
    )(yt, w_t, y_pred)
    return jnp.sum(partials)


def focal_loss_pallas(y_true, y_pred, class_weight, gamma=2, block_rows=None):
    """y_true: (B,1) or (B,) int; y_pred: (B,C) float (native dtype is kept);
    class_weight: (C,) float.  Matches the PyTorch FocalLoss.forward."""
    B, C = y_pred.shape
    gamma = int(gamma)                        # keep integer_pow lowering
    y_true = y_true.reshape(B).astype(jnp.int32)
    w32 = class_weight.astype(jnp.float32).reshape(C)

    if C <= 128 and 128 % C == 0:
        total = _packed_partials(y_true, y_pred, w32, gamma, block_rows)
    else:
        total = _rowwise_partials(y_true, y_pred, w32, gamma, block_rows)

    # Normalization hoisted out of the kernel; B is the *original* batch size.
    return total / (jnp.sum(w32) * jnp.float32(B))


def focal_loss_ref(y_true, y_pred, class_weight, gamma=2):
    """Pure-JAX reference matching the PyTorch module exactly."""
    B, C = y_pred.shape
    onehot = jax.nn.one_hot(y_true.reshape(B), C, dtype=jnp.float32)
    p = jnp.clip(y_pred.astype(jnp.float32), 1e-6, 1.0 - 1e-6)
    w = class_weight.astype(jnp.float32)
    focal = -onehot * (1.0 - p) ** gamma * jnp.log(p) * w
    active = onehot * (1.0 - p) * w
    bce = -onehot * jnp.log(p) * w
    loss = jnp.sum(focal) + jnp.sum(active) + jnp.sum(bce)
    return loss / (jnp.sum(w) * B)


if __name__ == "__main__":
    gamma = 2
    key = jax.random.PRNGKey(0)
    k1, k2, k3, k4, k5, k6 = jax.random.split(key, 6)

    # Case 1: module-spec shape (B=8, C=4) -> lane-packed path, single tile.
    B, C = 8, 4
    y_true = jax.random.randint(k1, (B, 1), 0, C, dtype=jnp.int32)
    y_pred = jax.nn.softmax(jax.random.normal(k2, (B, C), jnp.float32), -1)
    cw = jnp.array([1.0, 2.0, 0.5, 1.5], jnp.float32)
    loss = jax.block_until_ready(focal_loss_pallas(y_true, y_pred, cw, gamma))
    ref = focal_loss_ref(y_true, y_pred, cw, gamma)
    assert jnp.allclose(loss, ref, rtol=1e-5, atol=1e-6), (loss, ref)

    # Case 2: lane-packed path, multi-tile grid with a ragged OOB tail
    # (B*C = 6144 -> 48 packed rows; block_rows=32 -> 2 tiles, parallel).
    B2, C2 = 384, 16
    y_true2 = jax.random.randint(k3, (B2, 1), 0, C2, dtype=jnp.int32)
    y_pred2 = jax.nn.softmax(jax.random.normal(k4, (B2, C2), jnp.float32), -1)
    cw2 = jnp.linspace(0.5, 2.0, C2, dtype=jnp.float32)
    loss2 = jax.block_until_ready(
        focal_loss_pallas(y_true2, y_pred2, cw2, gamma, block_rows=32))
    ref2 = focal_loss_ref(y_true2, y_pred2, cw2, gamma)
    assert jnp.allclose(loss2, ref2, rtol=1e-5, atol=1e-6), (loss2, ref2)

    # Case 3: row-wise fallback (C=10 does not pack into 128 lanes), ragged
    # last tile exercising the sentinel-padded labels / wrapper weight gather.
    B3, C3 = 40, 10
    y_true3 = jax.random.randint(k5, (B3, 1), 0, C3, dtype=jnp.int32)
    y_pred3 = jax.nn.softmax(jax.random.normal(k6, (B3, C3), jnp.float32), -1)
    cw3 = jnp.linspace(0.25, 1.75, C3, dtype=jnp.float32)
    loss3 = jax.block_until_ready(
        focal_loss_pallas(y_true3, y_pred3, cw3, gamma, block_rows=16))
    ref3 = focal_loss_ref(y_true3, y_pred3, cw3, gamma)
    assert jnp.allclose(loss3, ref3, rtol=1e-5, atol=1e-6), (loss3, ref3)

    # Case 4: native-dtype streaming (bf16 y_pred) on the packed path.
    y_pred_bf16 = y_pred.astype(jnp.bfloat16)
    loss4 = jax.block_until_ready(focal_loss_pallas(y_true, y_pred_bf16, cw, gamma))
    ref4 = focal_loss_ref(y_true, y_pred_bf16.astype(jnp.float32), cw, gamma)
    assert jnp.allclose(loss4, ref4, rtol=1e-4, atol=1e-5), (loss4, ref4)

    print("KERNEL_OK")
</pallas_src>

<mosaic_0001>
module attributes {stable_mosaic.version = 11 : i64} {
  func.func @kernel(%arg0: i32, %arg1: memref<32x128xi8, #tpu.memory_space<vmem>>, %arg2: memref<32x128xf32, #tpu.memory_space<vmem>>, %arg3: memref<1x128xf32, #tpu.memory_space<vmem>>, %arg4: memref<1x1x1xf32, #tpu.memory_space<vmem>>) attributes {dimension_semantics = [#tpu.dimension_semantics<parallel>], iteration_bounds = array<i64: 1>, scalar_prefetch = 0 : i64, scratch_operands = 0 : i64, tpu.core_type = #tpu.core_type<tc>, window_params = [{transform_indices = @transform_0, window_bounds = array<i64: 32, 128>}, {transform_indices = @transform_1, window_bounds = array<i64: 32, 128>}, {pipeline_mode = #tpu.pipeline_mode<synchronous>, transform_indices = @transform_2, window_bounds = array<i64: 1, 128>}, {transform_indices = @transform_3, window_bounds = array<i64: 1, 1, 1>}]} {
    %c0 = arith.constant 0 : index
    %c0_0 = arith.constant 0 : index
    %0 = vector.load %arg1[%c0, %c0_0] : memref<32x128xi8, #tpu.memory_space<vmem>>, vector<32x128xi8>
    %c0_i8 = arith.constant 0 : i8
    %1 = vector.broadcast %c0_i8 : i8 to vector<32x128xi8>
    %2 = arith.cmpi ne, %0, %1 : vector<32x128xi8>
    %c0_1 = arith.constant 0 : index
    %c0_2 = arith.constant 0 : index
    %3 = vector.load %arg2[%c0_1, %c0_2] : memref<32x128xf32, #tpu.memory_space<vmem>>, vector<32x128xf32>
    %cst = arith.constant 9.99999997E-7 : f32
    %cst_3 = arith.constant 0.999998986 : f32
    %4 = vector.broadcast %cst : f32 to vector<32x128xf32>
    %5 = arith.maximumf %4, %3 : vector<32x128xf32>
    %6 = vector.broadcast %cst_3 : f32 to vector<32x128xf32>
    %7 = arith.minimumf %6, %5 : vector<32x128xf32>
    %cst_4 = arith.constant 1.000000e+00 : f32
    %8 = vector.broadcast %cst_4 : f32 to vector<32x128xf32>
    %9 = arith.subf %8, %7 : vector<32x128xf32>
    %10 = math.log %7 : vector<32x128xf32>
    %cst_5 = arith.constant 0.000000e+00 : f32
    %11 = vector.broadcast %cst_5 : f32 to vector<32x128xf32>
    %12 = arith.subf %11, %10 : vector<32x128xf32>
    %13 = arith.mulf %9, %9 : vector<32x128xf32>
    %cst_6 = arith.constant 1.000000e+00 : f32
    %14 = vector.broadcast %cst_6 : f32 to vector<32x128xf32>
    %15 = arith.addf %13, %14 : vector<32x128xf32>
    %16 = arith.mulf %12, %15 : vector<32x128xf32>
    %17 = arith.addf %16, %9 : vector<32x128xf32>
    %c0_7 = arith.constant 0 : index
    %c0_8 = arith.constant 0 : index
    %18 = vector.load %arg3[%c0_7, %c0_8] : memref<1x128xf32, #tpu.memory_space<vmem>>, vector<1x128xf32>
    %19 = vector.broadcast %18 : vector<1x128xf32> to vector<32x128xf32>
    %20 = arith.mulf %19, %17 : vector<32x128xf32>
    %cst_9 = arith.constant 0.000000e+00 : f32
    %21 = vector.broadcast %cst_9 : f32 to vector<32x128xf32>
    %22 = arith.select %2, %20, %21 : vector<32x128xi1>, vector<32x128xf32>
    %23 = vector.shape_cast %22 : vector<32x128xf32> to vector<1x32x128xf32>
    %cst_10 = arith.constant dense<0.000000e+00> : vector<1xf32>
    %24 = vector.multi_reduction <add>, %23, %cst_10 [1, 2] : vector<1x32x128xf32> to vector<1xf32>
    %25 = vector.shape_cast %24 : vector<1xf32> to vector<1x1x1xf32>
    %26 = vector.extract %25[0, 0, 0] : f32 from vector<1x1x1xf32>
    %27 = vector.broadcast %26 : f32 to vector<1x1x1xf32>
    %c0_11 = arith.constant 0 : index
    %c0_12 = arith.constant 0 : index
    %c0_13 = arith.constant 0 : index
    %28 = vector.load %arg4[%c0_11, %c0_12, %c0_13] : memref<1x1x1xf32, #tpu.memory_space<vmem>>, vector<1x1x1xf32>
    tpu.vector_store %arg4[%c0_11, %c0_12, %c0_13], %27 {strides = array<i32>} : memref<1x1x1xf32, #tpu.memory_space<vmem>>, vector<1x1x1xf32>,
    return
  }
  func.func @transform_0(%arg0: i32) -> (i32, i32) {
    %c0_i32 = arith.constant 0 : i32
    %c0_i32_0 = arith.constant 0 : i32
    return %arg0, %c0_i32 : i32, i32
  }
  func.func @transform_1(%arg0: i32) -> (i32, i32) {
    %c0_i32 = arith.constant 0 : i32
    %c0_i32_0 = arith.constant 0 : i32
    return %arg0, %c0_i32 : i32, i32
  }
  func.func @transform_2(%arg0: i32) -> (i32, i32) {
    %c0_i32 = arith.constant 0 : i32
    %c0_i32_0 = arith.constant 0 : i32
    %c0_i32_1 = arith.constant 0 : i32
    return %c0_i32, %c0_i32_0 : i32, i32
  }
  func.func @transform_3(%arg0: i32) -> (i32, i32, i32) {
    %c0_i32 = arith.constant 0 : i32
    %c0_i32_0 = arith.constant 0 : i32
    %c0_i32_1 = arith.constant 0 : i32
    return %arg0, %c0_i32, %c0_i32_0 : i32, i32, i32
  }
}

</mosaic_0001>

<bundles_post_ra>
// kernel: tpu_custom_call.1
= control target key start
LH: loop header
LB: loop body
LE: loop exit
PB: predicated region body
PF: predicated region fallthrough
CT: control target
= control target key end

     0   :  { %8 = vsyncpa [#allocation3], 0  ;;  %s300_s0 = inlined_call_operand.hbm [shape: s8[32,128], index: 0, kind: input, shape index: {}]   ;;  %s301_s1 = inlined_call_operand.hbm [shape: f32[1,128], index: 1, kind: input, shape index: {}]   ;;  %s302_s2 = inlined_call_operand.vmem [shape: f32[1,128], index: 2, kind: input, shape index: {}]   ;;  %s303_s3 = inlined_call_operand.hbm [shape: f32[1,1,1], index: 3, kind: output, shape index: {}]  }
   0x1   :  { %9 = vsyncpa [#allocation6], 0 }
   0x2   :  { %10 = vsyncpa [#allocation4], 0  ;;  %s16_s14 = sshll.u32 %s300_s0, 4  ;;  %s262_s15 = smov [#allocation2]   ;;  %s17_s14 = int_to_ptr.hbm [resolvable:$true] %s16_s14 }
   0x3   :  { %s18_s16 = sshll.u32 %s262_s15, 4  ;;  %s19_s16 = int_to_ptr.vmem [resolvable:$true] %s18_s16 }
   0x4   :  { %21 = dma.hbm_to_vmem [thread:$0]  %s17_s14, 128, %s19_s16, [#allocation3]  }
   0x5   :  { %25 = vsyncadd [#allocation6], 496  ;;  %s26_s19 = sshll.u32 %s301_s1, 4  ;;  %s263_s20 = smov [#allocation5]   ;;  %s27_s19 = int_to_ptr.hbm [resolvable:$true] %s26_s19 }
   0x6   :  { %s28_s21 = sshll.u32 %s263_s20, 4  ;;  %s264_s22 = smov 16   ;;  %s29_s21 = int_to_ptr.vmem [resolvable:$true] %s28_s21 }
   0x7   :  { %s265_s23 = smov 1  }
   0x8   :  { %34 = dma.hbm_to_vmem [thread:$0]  %s27_s19, 16, %s29_s21, [#allocation6], %s264_s22, %s264_s22, %s265_s23  }
   0x9   :  { %256 = dma.done.wait [#allocation3], 128  }
   0xa   :  { %257 = vsyncadd [#allocation3], 4294967168 }
   0xb   :  { %258 = dma.done.wait [#allocation6], 512  }
   0xc   :  { %259 = vsyncadd [#allocation6], 4294966784  ;;  %v47_v0 = vld [vmem:[#allocation2] sm:$0xff]  ;;  %v49_v1 = vld [vmem:[#allocation5] sm:$0xff]  ;;  %v266_v13 = vmov 0   ;;  %s156_s27 = sshll.u32 %s303_s3, 4  ;;  %s157_s27 = int_to_ptr.hbm [resolvable:$true] %s156_s27 }
   0xd   :  { %v50_v2 = vld [vmem:[#allocation5 + $0x8] sm:$0xff]  ;;  %vm48_vm0 = vnez %v47_v0  ;;  %v51_v3 = vld [vmem:[#allocation5 + $0x10] sm:$0xff]  ;;  %v52_v4 = vld [vmem:[#allocation5 + $0x18] sm:$0xff]  ;;  %v53_v5 = vmax.f32 %v49_v1, 1e-06  ;;  %vm147_vm9 = vcmask 0  }
   0xe   :  { %v54_v6 = vmax.f32 %v50_v2, 1e-06  ;;  %v55_v7 = vmax.f32 %v51_v3, 1e-06  ;;  %v56_v8 = vmax.f32 %v52_v4, 1e-06 }
   0xf   :  { %v57_v9 = vmin.f32 %v53_v5, 0.999999  ;;  %v101_v14 = vsel %vm48_vm0, 16843009, %v266_v13  ;;  %v175_v46 = vld [vmem:[%s302_s2] ss:$0 sm:$0xff] }
  0x10   :  { %v58_v10 = vmin.f32 %v54_v6, 0.999999  ;;  %v59_v11 = vmin.f32 %v55_v7, 0.999999  ;;  %v60_v12 = vmin.f32 %v56_v8, 0.999999  ;;  %v102_v17 = vunpack.c.0.s8 %v101_v14 }
  0x11   :  { %v61_v15 = vsub.f32 1.0, %v57_v9  ;;  %176 = vlog2.f32 %v57_v9  ;;  %v103_v19 = vunpack.c.1.s8 %v101_v14  ;;  %v104_v22 = vunpack.c.2.s8 %v101_v14  ;;  %s267_s2 = smov [#allocation7]  }
  0x12   :  { %v62_v16 = vsub.f32 1.0, %v58_v10  ;;  %v63_v18 = vsub.f32 1.0, %v59_v11  ;;  %178 = vlog2.f32 %v58_v10  ;;  %v64_v20 = vsub.f32 1.0, %v60_v12  ;;  %s154_s24 = sshll.u32 %s267_s2, 4  ;;  %s155_s24 = int_to_ptr.vmem [resolvable:$true] %s154_s24 }
  0x13   :  { %180 = vlog2.f32 %v59_v11  ;;  %v77_v21 = vmul.f32 %v61_v15, %v61_v15  ;;  %v105_v24 = vunpack.c.3.s8 %v101_v14  ;;  %v106_v26 = vpack.c.b16 %v102_v17, %v102_v17 }
  0x14   :  { %182 = vlog2.f32 %v60_v12  ;;  %v78_v23 = vmul.f32 %v62_v16, %v62_v16  ;;  %v79_v25 = vmul.f32 %v63_v18, %v63_v18  ;;  %v108_v27 = vpack.c.b16 %v103_v19, %v103_v19 }
  0x15   :  { %v110_v28 = vpack.c.b16 %v104_v22, %v104_v22  ;;  %v112_v29 = vpack.c.b16 %v105_v24, %v105_v24  ;;  %v80_v31 = vmul.f32 %v64_v20, %v64_v20  ;;  %v81_v32 = vadd.f32 1.0, %v77_v21 }
  0x16   :  { %v107_v33 = vpack.c.b8 %v106_v26, %v106_v26  ;;  %v109_v34 = vpack.c.b8 %v108_v27, %v108_v27  ;;  %v82_v37 = vadd.f32 1.0, %v78_v23  ;;  %v83_v42 = vadd.f32 1.0, %v79_v25 }
  0x17   :  { %v177_v30 = vpop.eup %176  ;;  %v111_v38 = vpack.c.b8 %v110_v28, %v110_v28  ;;  %v113_v39 = vpack.c.b8 %v112_v29, %v112_v29  ;;  %v84_v49 = vadd.f32 1.0, %v80_v31 }
  0x18   :  { %v179_v35 = vpop.eup %178  ;;  %v66_v36 = vmul.f32 0.6931472, %v177_v30  ;;  %vm114_vm1 = vnez %v107_v33  ;;  %vm115_vm2 = vnez %v109_v34 }
  0x19   :  { %v181_v40 = vpop.eup %180  ;;  %v68_v41 = vmul.f32 0.6931472, %v179_v35  ;;  %vm116_vm3 = vnez %v111_v38  ;;  %vm117_vm4 = vnez %v113_v39  ;;  %v118_v50 = vsel %vm114_vm1, 16843009, %v266_v13 }
  0x1a   :  { %v183_v43 = vpop.eup %182  ;;  %v70_v44 = vmul.f32 0.6931472, %v181_v40  ;;  %v73_v45 = vsub.f32 0.0, %v66_v36  ;;  %v119_v53 = vsel %vm115_vm2, 16843009, %v266_v13  ;;  %v122_v58 = vunpack.c.0.s8 %v118_v50 }
  0x1b   :  { %v72_v47 = vmul.f32 0.6931472, %v183_v43  ;;  %v74_v48 = vsub.f32 0.0, %v68_v41  ;;  %v120_v54 = vsel %vm116_vm3, 16843009, %v266_v13  ;;  %v123_v61 = vunpack.c.0.s8 %v119_v53 }
  0x1c   :  { %v75_v51 = vsub.f32 0.0, %v70_v44  ;;  %v85_v52 = vmul.f32 %v81_v32, %v73_v45  ;;  %v121_v57 = vsel %vm117_vm4, 16843009, %v266_v13  ;;  %v124_v62 = vunpack.c.0.s8 %v120_v54 }
  0x1d   :  { %v76_v55 = vsub.f32 0.0, %v72_v47  ;;  %v86_v56 = vmul.f32 %v82_v37, %v74_v48  ;;  %v125_v1 = vunpack.c.0.s8 %v121_v57  ;;  %vm126_vm5 = vcmp.ne.s32.totalorder %v122_v58, 0 }
  0x1e   :  { %v87_v59 = vmul.f32 %v83_v42, %v75_v51  ;;  %v89_v60 = vadd.f32 %v85_v52, %v61_v15  ;;  %vm127_vm6 = vcmp.ne.s32.totalorder %v123_v61, 0  ;;  %vm128_vm7 = vcmp.ne.s32.totalorder %v124_v62, 0 }
  0x1f   :  { %v88_v63 = vmul.f32 %v84_v49, %v76_v55  ;;  %v90_v0 = vadd.f32 %v86_v56, %v62_v16  ;;  %vm129_vm8 = vcmp.ne.s32.totalorder %v125_v1, 0 }
  0x20   :  { %v91_v2 = vadd.f32 %v87_v59, %v63_v18  ;;  %v97_v3 = vmul.f32 %v175_v46, %v89_v60 }
  0x21   :  { %v92_v4 = vadd.f32 %v88_v63, %v64_v20  ;;  %v98_v5 = vmul.f32 %v175_v46, %v90_v0 }
  0x22   :  { %v99_v6 = vmul.f32 %v175_v46, %v91_v2  ;;  %v130_v7 = vsel %vm126_vm5, %v97_v3, 0.0 }
  0x23   :  { %v100_v8 = vmul.f32 %v175_v46, %v92_v4  ;;  %v131_v9 = vsel %vm127_vm6, %v98_v5, 0.0 }
  0x24   :  { %v132_v10 = vsel %vm128_vm7, %v99_v6, 0.0  ;;  %v134_v11 = vadd.f32 %v131_v9, %v130_v7 }
  0x25   :  { %v133_v12 = vsel %vm129_vm8, %v100_v8, 0.0 }
  0x26   :  { %v135_v13 = vadd.f32 %v134_v11, %v132_v10 }
  0x28   :  { %v136_v14 = vadd.f32 %v135_v13, %v133_v12 }
  0x2a   :  { %137 = vadd.xlane.f32.xlu0 %v136_v14 }
  0x9d   :  { %v138_v15 = vpop.xlane.xlu0 %137 }
  0x9e   :  { %v139_v16 = vrot.slane %v138_v15, 4 }
  0xa0   :  { %v140_v17 = vadd.f32 %v139_v16, %v138_v15 }
  0xa2   :  { %v141_v18 = vrot.slane %v140_v17, 2 }
  0xa4   :  { %v142_v19 = vadd.f32 %v141_v18, %v140_v17 }
  0xa6   :  { %v143_v21 = vrot.slane %v142_v19, 1 }
  0xa8   :  { %v144_v20 = vadd.f32 %v143_v21, %v142_v19 }
  0xaa   :  { %167 = vpush %v144_v20 }
  0xdb   :  { %s168_s28 = spop %167 }
  0xdc   :  { %v146_v22 = vstv %s168_s28 }
  0xdd   :  { %148 = vst.msk [vmem:[#allocation7] sm:$0x1] %vm147_vm9, %v146_v22 }
  0xde   :  { %159 = dma.vmem_to_hbm [thread:$0]  %s155_s24, 16, %s157_s27, [#allocation4]  }
  0xdf   :  { %260 = dma.done.wait [#allocation4], 16  }
  0xe0   :  { %261 = vsyncadd [#allocation4], 4294967280 }
  0xe1   :  { %164 = vsyncpa [#allocation3], 1 }
  0xe2   :  { %165 = vsyncpa [#allocation6], 1 }
  0xe3   :  { %166 = vsyncpa [#allocation4], 1 }

</bundles_post_ra>
